<compile_context>
chip_gen: v7x
topology: tpu7x:2x2x1
jax: 0.10.0
libtpu: 0.0.40
codegen_flags: <defaults>
</compile_context>

<pallas_src>
import math
import functools

import jax
import jax.numpy as jnp
from jax.experimental import pallas as pl
from jax.experimental.pallas import tpu as pltpu


def _round_up(x, m):
    return (x + m - 1) // m * m


def _cdiv(a, b):
    return -(-a // b)


def _relgt_global_kernel(PHC, Pout, x_ref, wk_ref, sbd_ref, vbd_ref, lbd_ref,
                         vec_ref, o_ref):
    """One (tile_rows, P*out) lane-packed node tile of the fused global branch."""
    vec = vec_ref[...]                       # (3, Lmax) const slab
    b_k = vec[0:1, :PHC]                     # folded bias + log-count prior
    gamma = vec[1:2, :Pout]
    beta = vec[2:3, :Pout]

    # Folded query/key path:  dots = x @ (Wp Wq / sqrt(d) @ K_bd) + b_K
    dots = jnp.dot(x_ref[...], wk_ref[...],
                   preferred_element_type=jnp.float32) + b_k            # (T, P*HC)

    # Per-(packed-node, head) softmax.  Subtracting the SHARED row max across
    # all packed segments/heads is exact (per-segment shift invariance) and
    # keeps the reduction one lane-axis max — do not "fix" into per-segment
    # maxes.
    m = jnp.max(dots, axis=-1, keepdims=True)
    e = jnp.exp(dots - m)
    # Per-segment denominators broadcast back via block-diag-of-ones matmul.
    denom = jnp.dot(e, sbd_ref[...], preferred_element_type=jnp.float32)
    attn = e * pl.reciprocal(denom, approx=True)

    # Block-diagonal V yields all heads of all packed nodes already
    # concatenated along the lane axis.
    out = jnp.dot(attn.astype(vbd_ref.dtype), vbd_ref[...],
                  preferred_element_type=jnp.float32)                   # (T, P*out)

    # Per-segment LayerNorm (eps=1e-5) — segment means via block-diag ones/out.
    mu = jnp.dot(out, lbd_ref[...], preferred_element_type=jnp.float32)
    ctr = out - mu
    var = jnp.dot(ctr * ctr, lbd_ref[...], preferred_element_type=jnp.float32)
    normed = ctr * jax.lax.rsqrt(var + 1e-5)
    o_ref[...] = (normed * gamma + beta).astype(o_ref.dtype)


def relgt_global_forward(x, Wp, bp, Wq, bq, Wk, bk, Wv, bv,
                         k_codebook, v_codebook, log_count,
                         gamma, beta, *, heads, out_channels,
                         tile_n=2048, lane_pack=None, mxu_bf16=True):
    """Global branch of RelGTLayer.forward (eval mode), fused in one kernel."""
    f32 = jnp.float32
    N, in_ch = x.shape
    C = k_codebook.shape[0]
    dh = out_channels // heads
    HC = heads * C
    scale = 1.0 / math.sqrt(out_channels)   # reference: 1/sqrt(d), d = out_channels

    # ---- one-time parameter folding (f32, parameters only) -----------------
    W_qx = (Wp.astype(f32) @ Wq.astype(f32)) * scale                     # (in, out)
    b_qx = (bp.astype(f32) @ Wq.astype(f32) + bq.astype(f32)) * scale    # (1, out)
    k_proj = k_codebook.astype(f32) @ Wk.astype(f32) + bk.astype(f32)    # (C, out)
    v_proj = v_codebook.astype(f32) @ Wv.astype(f32) + bv.astype(f32)    # (C, out)

    # Head-block-diagonal packing (no per-head loop / transpose / concat in
    # the kernel).
    K_bd = jnp.zeros((out_channels, HC), f32)
    V_bd = jnp.zeros((HC, out_channels), f32)
    for h in range(heads):
        kh = k_proj[:, h * dh:(h + 1) * dh]                              # (C, dh)
        vh = v_proj[:, h * dh:(h + 1) * dh]                              # (C, dh)
        K_bd = K_bd.at[h * dh:(h + 1) * dh, h * C:(h + 1) * C].set(kh.T)
        V_bd = V_bd.at[h * C:(h + 1) * C, h * dh:(h + 1) * dh].set(vh)
    logc = jnp.tile(log_count.reshape(1, C).astype(f32), (1, heads))     # (1, HC)

    # Fold K_bd (and the prior) into the query weights: q is never needed.
    W_xK = W_qx @ K_bd                                                   # (in, HC)
    b_K = b_qx @ K_bd + logc                                             # (1, HC)

    # ---- P-way lane packing so logits/output occupy >=128 lanes -------------
    if lane_pack is None:
        lane_pack = max(1, _cdiv(128, out_channels))
    P = int(lane_pack)
    Pin, PHC, Pout = P * in_ch, P * HC, P * out_channels

    eyeP = jnp.eye(P, dtype=f32)
    W_xK_P = jnp.kron(eyeP, W_xK)                                        # (Pin, PHC)
    b_K_P = jnp.tile(b_K, (1, P))                                        # (1, PHC)
    S_bd_P = jnp.kron(jnp.eye(P * heads, dtype=f32), jnp.ones((C, C), f32))
    V_bd_P = jnp.kron(eyeP, V_bd)                                        # (PHC, Pout)
    L_bd_P = jnp.kron(eyeP, jnp.full((out_channels, out_channels),
                                     1.0 / out_channels, f32))           # (Pout, Pout)
    gamma_P = jnp.tile(gamma.reshape(1, out_channels).astype(f32), (1, P))
    beta_P = jnp.tile(beta.reshape(1, out_channels).astype(f32), (1, P))

    # Single const slab for the three row vectors (fewer DMA descriptors).
    Lmax = max(PHC, Pout)
    pad_row = lambda v: jnp.pad(v, ((0, 0), (0, Lmax - v.shape[1])))
    vec_slab = jnp.concatenate(
        [pad_row(b_K_P), pad_row(gamma_P), pad_row(beta_P)], axis=0)     # (3, Lmax)

    mxu_dtype = jnp.bfloat16 if mxu_bf16 else f32
    W_xK_P = W_xK_P.astype(mxu_dtype)       # MXU operands cast wrapper-side
    V_bd_P = V_bd_P.astype(mxu_dtype)

    # ---- node-dim padding / packing / tile choice ---------------------------
    rows = _cdiv(N, P)
    req_rows = max(8, _round_up(max(int(tile_n), P) // P, 8))
    steps = max(2, _cdiv(rows, req_rows))
    if steps % 2:
        steps += 1                           # even split across v7x's 2 TensorCores
    tile_rows = _round_up(_cdiv(rows, steps), 16)   # 16: safe for bf16 sublane tiling
    steps = max(1, _cdiv(rows, tile_rows))
    rows_pad = steps * tile_rows
    n_pad = rows_pad * P

    x_p = x.astype(mxu_dtype)
    if n_pad != N:
        x_p = jnp.pad(x_p, ((0, n_pad - N), (0, 0)))
    x_packed = x_p.reshape(rows_pad, Pin)

    def _const(shape):
        return pl.BlockSpec(shape, lambda i: (0, 0))     # VMEM-resident params

    in_specs = [
        pl.BlockSpec((tile_rows, Pin), lambda i: (i, 0)),   # x tile (pipelined)
        _const((Pin, PHC)),                                 # folded W_xK (block-diag)
        _const((PHC, PHC)),                                 # softmax-denominator ones
        _const((PHC, Pout)),                                # block-diag V
        _const((Pout, Pout)),                               # LayerNorm mean matrix
        _const((3, Lmax)),                                  # [b_K ; gamma ; beta]
    ]
    out_specs = pl.BlockSpec((tile_rows, Pout), lambda i: (i, 0))

    # VMEM budget: double-buffered x/out tiles + (double-buffered) consts + slack.
    bpe_x = 2 if mxu_bf16 else 4
    const_bytes = (W_xK_P.size * W_xK_P.dtype.itemsize
                   + S_bd_P.size * 4
                   + V_bd_P.size * V_bd_P.dtype.itemsize
                   + L_bd_P.size * 4
                   + vec_slab.size * 4)
    io_bytes = 2 * tile_rows * (Pin * bpe_x + Pout * 4)
    vmem_limit = int(min(max(2 * const_bytes + io_bytes + (2 << 20), 4 << 20),
                         48 << 20))

    flops = (2 * rows_pad * (Pin * PHC + PHC * PHC + PHC * Pout + 2 * Pout * Pout)
             + 8 * rows_pad * Pout)
    cost = pl.CostEstimate(
        flops=int(flops),
        transcendentals=int(rows_pad * (2 * PHC + Pout)),
        bytes_accessed=int(n_pad * in_ch * bpe_x + n_pad * out_channels * 4
                           + const_bytes))

    kernel = functools.partial(_relgt_global_kernel, PHC, Pout)

    out = pl.pallas_call(
        kernel,
        out_shape=jax.ShapeDtypeStruct((rows_pad, Pout), f32),
        grid_spec=pltpu.PrefetchScalarGridSpec(
            num_scalar_prefetch=0,
            grid=(steps,),
            in_specs=in_specs,
            out_specs=out_specs),
        compiler_params=pltpu.CompilerParams(
            dimension_semantics=("parallel",),
            vmem_limit_bytes=vmem_limit),
        cost_estimate=cost,
    )(x_packed, W_xK_P, S_bd_P, V_bd_P, L_bd_P, vec_slab)

    return out.reshape(n_pad, out_channels)[:N]


def _reference(x, Wp, bp, Wq, bq, Wk, bk, Wv, bv,
               k_codebook, v_codebook, log_count,
               gamma, beta, heads, out_channels):
    """Pure-JAX mirror of the PyTorch global_forward + LayerNorm (eval)."""
    head_dim = out_channels // heads
    scale = 1.0 / math.sqrt(out_channels)
    q = (x @ Wp + bp) @ Wq + bq
    k = k_codebook @ Wk + bk
    v = v_codebook @ Wv + bv

    def split(t):  # 'n (h d) -> h n d'
        n = t.shape[0]
        return jnp.transpose(t.reshape(n, heads, head_dim), (1, 0, 2))

    qh, kh, vh = split(q), split(k), split(v)
    dots = jnp.einsum('hid,hjd->hij', qh, kh) * scale + log_count.reshape(1, 1, -1)
    attn = jax.nn.softmax(dots, axis=-1)
    out = jnp.einsum('hij,hjd->hid', attn, vh)
    out = jnp.transpose(out, (1, 0, 2)).reshape(x.shape[0], out_channels)
    mu = out.mean(-1, keepdims=True)
    var = ((out - mu) ** 2).mean(-1, keepdims=True)
    return (out - mu) / jnp.sqrt(var + 1e-5) * gamma + beta


if __name__ == "__main__":
    # Small shapes consistent with the module's __init__; N is deliberately
    # not a multiple of (lane_pack * tile rows) to exercise padding.
    N = 300                  # nodes (rows of x) in the current batch
    in_channels = 16
    out_channels = 32
    global_dim = 32
    heads = 2
    num_centroids = 16
    num_nodes_total = 1024   # size of the registered c_idx buffer

    key = jax.random.PRNGKey(0)
    ks = jax.random.split(key, 12)

    x = jax.random.normal(ks[0], (N, in_channels), jnp.float32)

    # PyTorch Linear weights are (out, in); stored pre-transposed (in, out).
    def lin(k, din, dout, s=0.1):
        kw, kb = jax.random.split(k)
        return (jax.random.normal(kw, (din, dout), jnp.float32) * s,
                jax.random.normal(kb, (1, dout), jnp.float32) * s)

    Wp, bp = lin(ks[1], in_channels, global_dim)          # lin_proj_g
    Wq, bq = lin(ks[2], global_dim, out_channels)         # lin_query_g
    Wk, bk = lin(ks[3], global_dim, out_channels)         # lin_key_g
    Wv, bv = lin(ks[4], global_dim, out_channels)         # lin_value_g

    # VectorQuantizerEMA codebooks (get_k / get_v), detached copies.
    k_codebook = jax.random.normal(ks[5], (num_centroids, global_dim), jnp.float32)
    v_codebook = jax.random.normal(ks[6], (num_centroids, global_dim), jnp.float32)

    # c_idx buffer -> centroid usage counts -> log prior.
    c_idx = jax.random.randint(ks[7], (num_nodes_total,), 0, num_centroids)
    counts = jnp.zeros((num_centroids,), jnp.float32).at[c_idx].add(1.0)
    log_count = jnp.log(counts).reshape(1, num_centroids)

    # layer_norm_global default init (gamma=1, beta=0).
    gamma = jnp.ones((1, out_channels), jnp.float32)
    beta = jnp.zeros((1, out_channels), jnp.float32)

    out = relgt_global_forward(
        x, Wp, bp, Wq, bq, Wk, bk, Wv, bv,
        k_codebook, v_codebook, log_count, gamma, beta,
        heads=heads, out_channels=out_channels,
        tile_n=2048, mxu_bf16=True)
    out = jax.block_until_ready(out)

    ref = _reference(x, Wp, bp, Wq, bq, Wk, bk, Wv, bv,
                     k_codebook, v_codebook, log_count, gamma, beta,
                     heads, out_channels)
    assert out.shape == (N, out_channels)
    # Tolerance covers bf16 MXU operands + the approximate (EUP) softmax
    # reciprocal; with mxu_bf16=False the kernel matches to ~2e-3.
    assert bool(jnp.allclose(out, ref, rtol=2e-2, atol=2e-2)), "mismatch vs reference"

    print("KERNEL_OK")
</pallas_src>

<mosaic_0001>
module attributes {stable_mosaic.version = 11 : i64} {
  func.func @_relgt_global_kernel(%arg0: i32, %arg1: memref<48x64xbf16, #tpu.memory_space<vmem>>, %arg2: memref<64x128xbf16, #tpu.memory_space<vmem>>, %arg3: memref<128x128xf32, #tpu.memory_space<vmem>>, %arg4: memref<128x128xbf16, #tpu.memory_space<vmem>>, %arg5: memref<128x128xf32, #tpu.memory_space<vmem>>, %arg6: memref<3x128xf32, #tpu.memory_space<vmem>>, %arg7: memref<48x128xf32, #tpu.memory_space<vmem>>) attributes {dimension_semantics = [#tpu.dimension_semantics<parallel>], iteration_bounds = array<i64: 2>, scalar_prefetch = 0 : i64, scratch_operands = 0 : i64, tpu.core_type = #tpu.core_type<tc>, window_params = [{transform_indices = @transform_0, window_bounds = array<i64: 48, 64>}, {pipeline_mode = #tpu.pipeline_mode<synchronous>, transform_indices = @transform_1, window_bounds = array<i64: 64, 128>}, {pipeline_mode = #tpu.pipeline_mode<synchronous>, transform_indices = @transform_2, window_bounds = array<i64: 128, 128>}, {pipeline_mode = #tpu.pipeline_mode<synchronous>, transform_indices = @transform_3, window_bounds = array<i64: 128, 128>}, {pipeline_mode = #tpu.pipeline_mode<synchronous>, transform_indices = @transform_4, window_bounds = array<i64: 128, 128>}, {pipeline_mode = #tpu.pipeline_mode<synchronous>, transform_indices = @transform_5, window_bounds = array<i64: 3, 128>}, {transform_indices = @transform_6, window_bounds = array<i64: 48, 128>}]} {
    %c0 = arith.constant 0 : index
    %c0_0 = arith.constant 0 : index
    %0 = vector.load %arg6[%c0, %c0_0] : memref<3x128xf32, #tpu.memory_space<vmem>>, vector<3x128xf32>
    %1 = vector.extract_strided_slice %0 {offsets = [0, 0], sizes = [1, 128], strides = [1, 1]} : vector<3x128xf32> to vector<1x128xf32>
    %2 = vector.extract_strided_slice %0 {offsets = [1, 0], sizes = [1, 128], strides = [1, 1]} : vector<3x128xf32> to vector<1x128xf32>
    %3 = vector.extract_strided_slice %0 {offsets = [2, 0], sizes = [1, 128], strides = [1, 1]} : vector<3x128xf32> to vector<1x128xf32>
    %c0_1 = arith.constant 0 : index
    %c0_2 = arith.constant 0 : index
    %4 = vector.load %arg1[%c0_1, %c0_2] : memref<48x64xbf16, #tpu.memory_space<vmem>>, vector<48x64xbf16>
    %c0_3 = arith.constant 0 : index
    %c0_4 = arith.constant 0 : index
    %5 = vector.load %arg2[%c0_3, %c0_4] : memref<64x128xbf16, #tpu.memory_space<vmem>>, vector<64x128xbf16>
    %cst = arith.constant dense<0.000000e+00> : vector<48x128xf32>
    %6 = tpu.matmul %4, %5, %cst {dimension_numbers = #tpu.dot_dimension_numbers<[1], [0], [0], [1], [0, 0, 1, 1], [], []>} : vector<48x64xbf16>, vector<64x128xbf16>, vector<48x128xf32> -> vector<48x128xf32>
    %7 = vector.broadcast %1 : vector<1x128xf32> to vector<48x128xf32>
    %8 = arith.addf %6, %7 : vector<48x128xf32>
    %cst_5 = arith.constant dense<0xFF800000> : vector<48xf32>
    %9 = vector.multi_reduction <maximumf>, %8, %cst_5 [1] : vector<48x128xf32> to vector<48xf32>
    %10 = vector.shape_cast %9 : vector<48xf32> to vector<48x1xf32>
    %11 = vector.broadcast %10 : vector<48x1xf32> to vector<48x128xf32>
    %12 = arith.subf %8, %11 : vector<48x128xf32>
    %13 = math.exp %12 : vector<48x128xf32>
    %c0_6 = arith.constant 0 : index
    %c0_7 = arith.constant 0 : index
    %14 = vector.load %arg3[%c0_6, %c0_7] : memref<128x128xf32, #tpu.memory_space<vmem>>, vector<128x128xf32>
    %cst_8 = arith.constant dense<0.000000e+00> : vector<48x128xf32>
    %15 = tpu.matmul %13, %14, %cst_8 {dimension_numbers = #tpu.dot_dimension_numbers<[1], [0], [0], [1], [0, 0, 1, 1], [], []>} : vector<48x128xf32>, vector<128x128xf32>, vector<48x128xf32> -> vector<48x128xf32>
    %16 = tpu.reciprocal %15 {approx = true} : vector<48x128xf32> -> vector<48x128xf32>
    %17 = arith.mulf %13, %16 : vector<48x128xf32>
    %18 = arith.truncf %17 : vector<48x128xf32> to vector<48x128xbf16>
    %c0_9 = arith.constant 0 : index
    %c0_10 = arith.constant 0 : index
    %19 = vector.load %arg4[%c0_9, %c0_10] : memref<128x128xbf16, #tpu.memory_space<vmem>>, vector<128x128xbf16>
    %cst_11 = arith.constant dense<0.000000e+00> : vector<48x128xf32>
    %20 = tpu.matmul %18, %19, %cst_11 {dimension_numbers = #tpu.dot_dimension_numbers<[1], [0], [0], [1], [0, 0, 1, 1], [], []>} : vector<48x128xbf16>, vector<128x128xbf16>, vector<48x128xf32> -> vector<48x128xf32>
    %c0_12 = arith.constant 0 : index
    %c0_13 = arith.constant 0 : index
    %21 = vector.load %arg5[%c0_12, %c0_13] : memref<128x128xf32, #tpu.memory_space<vmem>>, vector<128x128xf32>
    %cst_14 = arith.constant dense<0.000000e+00> : vector<48x128xf32>
    %22 = tpu.matmul %20, %21, %cst_14 {dimension_numbers = #tpu.dot_dimension_numbers<[1], [0], [0], [1], [0, 0, 1, 1], [], []>} : vector<48x128xf32>, vector<128x128xf32>, vector<48x128xf32> -> vector<48x128xf32>
    %23 = arith.subf %20, %22 : vector<48x128xf32>
    %24 = arith.mulf %23, %23 : vector<48x128xf32>
    %c0_15 = arith.constant 0 : index
    %c0_16 = arith.constant 0 : index
    %25 = vector.load %arg5[%c0_15, %c0_16] : memref<128x128xf32, #tpu.memory_space<vmem>>, vector<128x128xf32>
    %cst_17 = arith.constant dense<0.000000e+00> : vector<48x128xf32>
    %26 = tpu.matmul %24, %25, %cst_17 {dimension_numbers = #tpu.dot_dimension_numbers<[1], [0], [0], [1], [0, 0, 1, 1], [], []>} : vector<48x128xf32>, vector<128x128xf32>, vector<48x128xf32> -> vector<48x128xf32>
    %cst_18 = arith.constant 9.99999974E-6 : f32
    %27 = vector.broadcast %cst_18 : f32 to vector<48x128xf32>
    %28 = arith.addf %26, %27 : vector<48x128xf32>
    %29 = math.rsqrt %28 : vector<48x128xf32>
    %30 = arith.mulf %23, %29 : vector<48x128xf32>
    %31 = vector.broadcast %2 : vector<1x128xf32> to vector<48x128xf32>
    %32 = arith.mulf %30, %31 : vector<48x128xf32>
    %33 = vector.broadcast %3 : vector<1x128xf32> to vector<48x128xf32>
    %34 = arith.addf %32, %33 : vector<48x128xf32>
    %c0_19 = arith.constant 0 : index
    %c0_20 = arith.constant 0 : index
    %35 = vector.load %arg7[%c0_19, %c0_20] : memref<48x128xf32, #tpu.memory_space<vmem>>, vector<48x128xf32>
    tpu.vector_store %arg7[%c0_19, %c0_20], %34 {strides = array<i32>} : memref<48x128xf32, #tpu.memory_space<vmem>>, vector<48x128xf32>,
    return
  }
  func.func @transform_0(%arg0: i32) -> (i32, i32) {
    %c0_i32 = arith.constant 0 : i32
    %c0_i32_0 = arith.constant 0 : i32
    return %arg0, %c0_i32 : i32, i32
  }
  func.func @transform_1(%arg0: i32) -> (i32, i32) {
    %c0_i32 = arith.constant 0 : i32
    %c0_i32_0 = arith.constant 0 : i32
    %c0_i32_1 = arith.constant 0 : i32
    return %c0_i32, %c0_i32_0 : i32, i32
  }
  func.func @transform_2(%arg0: i32) -> (i32, i32) {
    %c0_i32 = arith.constant 0 : i32
    %c0_i32_0 = arith.constant 0 : i32
    %c0_i32_1 = arith.constant 0 : i32
    return %c0_i32, %c0_i32_0 : i32, i32
  }
  func.func @transform_3(%arg0: i32) -> (i32, i32) {
    %c0_i32 = arith.constant 0 : i32
    %c0_i32_0 = arith.constant 0 : i32
    %c0_i32_1 = arith.constant 0 : i32
    return %c0_i32, %c0_i32_0 : i32, i32
  }
  func.func @transform_4(%arg0: i32) -> (i32, i32) {
    %c0_i32 = arith.constant 0 : i32
    %c0_i32_0 = arith.constant 0 : i32
    %c0_i32_1 = arith.constant 0 : i32
    return %c0_i32, %c0_i32_0 : i32, i32
  }
  func.func @transform_5(%arg0: i32) -> (i32, i32) {
    %c0_i32 = arith.constant 0 : i32
    %c0_i32_0 = arith.constant 0 : i32
    %c0_i32_1 = arith.constant 0 : i32
    return %c0_i32, %c0_i32_0 : i32, i32
  }
  func.func @transform_6(%arg0: i32) -> (i32, i32) {
    %c0_i32 = arith.constant 0 : i32
    %c0_i32_0 = arith.constant 0 : i32
    return %arg0, %c0_i32 : i32, i32
  }
}

</mosaic_0001>

<bundles_post_ra>
// kernel: tpu_custom_call.1
= control target key start
LH: loop header
LB: loop body
LE: loop exit
PB: predicated region body
PF: predicated region fallthrough
CT: control target
= control target key end

     0   :  { %s2067_s0 = inlined_call_operand.vmem [shape: bf16[96,64], index: 0, kind: input, shape index: {}]   ;;  %s2068_s1 = inlined_call_operand.hbm [shape: bf16[64,128], index: 1, kind: input, shape index: {}]   ;;  %s2069_s2 = inlined_call_operand.hbm [shape: f32[128,128], index: 2, kind: input, shape index: {}]   ;;  %s2070_s3 = inlined_call_operand.vmem [shape: bf16[128,128], index: 3, kind: input, shape index: {}]   ;;  %s2071_s4 = inlined_call_operand.hbm [shape: f32[128,128], index: 4, kind: input, shape index: {}]   ;;  %s2072_s5 = inlined_call_operand.vmem [shape: f32[3,128], index: 5, kind: input, shape index: {}]   ;;  %s2073_s6 = inlined_call_operand.hbm [shape: f32[96,128], index: 6, kind: output, shape index: {}]  }
   0x1   :  { %2079 = sst [smem:[#allocation13_spill]] %s2069_s2 }
   0x2   :  { %11 = vsyncpa [#allocation3], 0 }
   0x3   :  { %12 = vsyncpa [#allocation6], 0 }
   0x4   :  { %13 = vsyncpa [#allocation4], 0 }
   0x5   :  { %15 = vsyncpa [#allocation4 + $0x1], 0  ;;  %s1780_s21 = smov 0   ;;  %s1782_s22 = smov 0  }
   0x6   :  { %s1784_s23 = smov 0   ;;  %s1786_s24 = smov 0  }
   0x7 LB: > { %s1801_s25 = sadd.s32 4294967295, %s1731_s24   ;;  %s1063_s26 = sadd.s32 4294967294, %s1731_s24   ;;  %s1731_s24 = sphi %s1786_s24, %s2100_s24   ;;  %s1727_s23 = sphi %s1784_s23, %s2099_s23   ;;  %s1723_s22 = sphi %s1782_s22, %s2098_s22   ;;  %s1719_s21 = sphi %s1780_s21, %s2097_s21  }
   0x8   : > { %s1805_s27 = sadd.s32 1, %s1731_s24   ;;  %s159_s28 = sadd.s32 1, %s1727_s23 }
   0x9   : > { %s156_s29 = ssub.s32 %s1731_s24, %s1805_s27  ;;  %p169_p0 = scmp.ne.s32.totalorder %s1727_s23, %s1723_s22 }
   0xa   : > { %p157_p1 = scmp.eq.s32.totalorder %s156_s29, 0  ;;  %p170_p2 = scmp.eq.s32.totalorder %s1801_s25, 1 }
   0xb   : > { %p175_p3 = scmp.ne.s32.totalorder %s1723_s22, %s1719_s21  ;;  %p176_p4 = scmp.eq.s32.totalorder %s1063_s26, 1 }
   0xc   : > { %s1816_s30 = scalar_select %p157_p1, %s1727_s23, %s159_s28  }
   0xd   : > { %p1818_p5 = por %p170_p2, %p169_p0  ;;  %p1822_p6 = por %p176_p4, %p175_p3 }
   0xe   : > { %2080 = sst [smem:[#allocation12_spill]] %s1816_s30  ;;  %p1064_p7 = scmp.ge.s32.totalorder %s1731_s24, 1 }
   0xf   : > { %s2081_s7 = scalar_select %p1818_p5, 1, 0 }
  0x10   : > { %s2082_s8 = scalar_select %p1822_p6, 1, 0 }
  0x11   : > { %p183_p8 = scmp.lt.s32.totalorder %s1731_s24, 3  ;;  %p2074_p9 = scmp.eq.s32.totalorder %s1801_s25, 0 }
  0x12   : > { %s1733_s10 = smov [#allocation5]   ;;  %s1734_s13 = smov [#allocation2]  }
  0x13   : > { %p1829_p10 = pnand %p1064_p7, %p183_p8  ;;  %s208_s11 = sshll.u32 %s1733_s10, 4  ;;  %s209_s11 = int_to_ptr.vmem [resolvable:$true] %s208_s11 }
  0x14   : > { %s195_s14 = sshll.u32 %s1734_s13, 4  ;;  %s2085_s2 = sld [smem:[#allocation13_spill]]  ;;  %s1841_s14 = int_to_ptr.vmem [resolvable:$true] %s195_s14 }
  0x15   : > { %s2083_s9 = scalar_select %p1829_p10, 1, 0 }
  0x16   : > { %p1462_p11 = pneg %p1829_p10 }
  0x18   : > { %p1837_p12 = pnand %p2074_p9, %p1462_p11 }
  0x1a   : > { %s1577_s17 = scalar_lea.hbm %s2085_s2, 2048  ;;  %p1851_p0 = pneg %p1837_p12 }
  0x1b   : > { %p1578_p13 = scmp.ne.s32.totalorder %s2085_s2, %s1577_s17  ;;  %p1584_p3 = scmp.lt.u32.totalorder %s1577_s17, %s2085_s2 }
  0x1d   : > { %p1580_p1 = pnand %p1851_p0, %p1578_p13 }
  0x1f   : > { %p1581_p2 = pneg %p1580_p1 }
  0x21   : > { %p1586_p4 = pnand %p1584_p3, %p1581_p2 }
  0x23   : > { %1589 = shalt.err (!%p1586_p4)
}
  0x24   : > { %s1590_s29 = scalar_lea.vmem %s209_s11, 2048  ;;  %p1598_p9 = scmp.lt.s32.totalorder %s209_s11, %s209_s11 }
  0x25   : > { %p1591_p7 = scmp.ne.s32.totalorder %s209_s11, %s1590_s29  ;;  %p1599_p6 = scmp.lt.s32.totalorder %s1590_s29, %s1590_s29 }
  0x27   : > { %p1593_p8 = pnand %p1591_p7, %p1851_p0  ;;  %p1600_p5 = por %p1599_p6, %p1598_p9 }
  0x29   : > { %p1594_p11 = pneg %p1593_p8 }
  0x2b   : > { %p1601_p10 = pnand %p1600_p5, %p1594_p11 }
  0x2d   : > { %1604 = shalt.err (!%p1601_p10)
}
  0x2e   : > { %s2077_s10 = smov 128   ;;  %s2078_s13 = smov 8  }
  0x2f   : > { %1468 = dma.hbm_to_vmem [thread:$0]  (!%p1837_p12), %s2085_s2, 2048, %s209_s11, [#allocation6], %s2077_s10, %s2077_s10, %s2078_s13  }
  0x30   : > { %s1605_s19 = scalar_lea.hbm %s2068_s1, 512 }
  0x31   : > { %p1606_p5 = scmp.ne.s32.totalorder %s2068_s1, %s1605_s19  ;;  %p1612_p10 = scmp.lt.u32.totalorder %s1605_s19, %s2068_s1 }
  0x33   : > { %p1608_p6 = pnand %p1606_p5, %p1851_p0 }
  0x35   : > { %p1609_p9 = pneg %p1608_p6 }
  0x37   : > { %p1614_p13 = pnand %p1612_p10, %p1609_p9 }
  0x39   : > { %1617 = shalt.err (!%p1614_p13)
}
  0x3a   : > { %s1618_s11 = scalar_lea.vmem %s1841_s14, 512  ;;  %p1626_p4 = scmp.lt.s32.totalorder %s1841_s14, %s1841_s14 }
  0x3b   : > { %p1619_p1 = scmp.ne.s32.totalorder %s1841_s14, %s1618_s11  ;;  %p1627_p7 = scmp.lt.s32.totalorder %s1618_s11, %s1618_s11 }
  0x3d   : > { %p1621_p2 = pnand %p1619_p1, %p1851_p0  ;;  %p1628_p8 = por %p1627_p7, %p1626_p4 }
  0x3f   : > { %p1622_p3 = pneg %p1621_p2 }
  0x41   : > { %p1629_p11 = pnand %p1628_p8, %p1622_p3 }
  0x43   : > { %1632 = shalt.err (!%p1629_p11)
}
  0x44   : > { %s1737_s15 = smov 64   ;;  %s1738_s30 = smov 4  }
  0x45   : > { %1465 = dma.hbm_to_vmem [thread:$0]  (!%p1837_p12), %s2068_s1, 512, %s1841_s14, [#allocation3], %s1737_s15, %s1737_s15, %s1738_s30  }
  0x46   : > { %s1739_s18 = smov [#allocation7]   ;;  %s1633_s29 = scalar_lea.hbm %s2071_s4, 2048 }
  0x47   : > { %s224_s19 = sshll.u32 %s1739_s18, 4  ;;  %p1634_p5 = scmp.ne.s32.totalorder %s2071_s4, %s1633_s29  ;;  %s225_s19 = int_to_ptr.vmem [resolvable:$true] %s224_s19 }
  0x48   : > { %p1640_p10 = scmp.lt.u32.totalorder %s1633_s29, %s2071_s4 }
  0x49   : > { %p1636_p6 = pnand %p1634_p5, %p1851_p0 }
  0x4b   : > { %p1637_p9 = pneg %p1636_p6 }
  0x4d   : > { %p1642_p13 = pnand %p1640_p10, %p1637_p9 }
  0x4f   : > { %1645 = shalt.err (!%p1642_p13)
}
  0x50   : > { %s1646_s14 = scalar_lea.vmem %s225_s19, 2048  ;;  %p1654_p4 = scmp.lt.s32.totalorder %s225_s19, %s225_s19 }
  0x51   : > { %p1647_p1 = scmp.ne.s32.totalorder %s225_s19, %s1646_s14  ;;  %p1655_p7 = scmp.lt.s32.totalorder %s1646_s14, %s1646_s14 }
  0x53   : > { %p1649_p2 = pnand %p1647_p1, %p1851_p0  ;;  %p1656_p8 = por %p1655_p7, %p1654_p4 }
  0x55   : > { %p1650_p3 = pneg %p1649_p2 }
  0x57   : > { %p1657_p11 = pnand %p1656_p8, %p1650_p3 }
  0x59   : > { %1660 = shalt.err (!%p1657_p11)
}
  0x5a   : > { %s2087_s10 = smov 8   ;;  %s2088_s15 = smov 128  }
  0x5b   : > { %1471 = dma.hbm_to_vmem [thread:$0]  (!%p1837_p12), %s2071_s4, 2048, %s225_s19, [#allocation6], %s2088_s15, %s2088_s15, %s2087_s10  }
  0x5c   : > { %p2089_p5 = scmp.ne.s32.totalorder %s2083_s9, 0 }
  0x5d   : > { %p2090_p0 = scmp.eq.s32.totalorder (!%p2089_p5), %s1801_s25, 0 }
  0x5e   : > { %252 = sbr.rel (%p2089_p5) target bundleno = 1420 (0x58c), region = 44 }
  0x65   : > { %1706 = dma.done.wait (%p2090_p0), [#allocation3], 512   ;;  %p2091_p6 = pmov %p2090_p0 }
  0x66   : > { %p2092_p9 = pmov %p2090_p0 }
  0x67   : > { %1708 = vsyncadd (%p2091_p6), [#allocation3], 4294966784 }
  0x68   : > { %1710 = dma.done.wait (%p2092_p9), [#allocation6], 4096   ;;  %p2093_p10 = pmov %p2090_p0 }
  0x69   : > { %s290_s12 = smul.u32 6, %s1801_s25  ;;  %v1740_v0 = vmov 0.0   ;;  %vm1741_vm0 = vmmov 0   ;;  %v1526_v1 = vld [vmem:[#allocation2] sm:$0xff]   ;;  %v1527_v2 = vld [vmem:[#allocation2 + $0x8] sm:$0xff]   ;;  %v1528_v3 = vld [vmem:[#allocation2 + $0x10] sm:$0xff]   ;;  %v313_v20 = vlaneseq }
  0x6a   : > { %1712 = vsyncadd (%p2093_p10), [#allocation6], 4294963200  ;;  %1180 = vmatprep.subr.bf16.mxu0 %v1740_v0  ;;  %1188 = vmatprep.mubr.msk.bf16.mxu0 %vm1741_vm0, %v1740_v0  ;;  %v1529_v4 = vld [vmem:[#allocation2 + $0x18] sm:$0xff]   ;;  %vm356_vm1 = vcmask 523264   ;;  %v453_v8 = vld [vmem:[#allocation5] sm:$0xff]  ;;  %s287_s18 = sand.u32 1, %s1723_s22  }
  0x6b   : > { %p291_p12 = scmp.lt.s32.totalorder %s290_s12, 11  ;;  %1181 = vmatpush3.bf16.msra.mxu0 %v1526_v1  ;;  %v454_v9 = vld [vmem:[#allocation5 + $0x8] sm:$0xff]  ;;  %v455_v10 = vld [vmem:[#allocation5 + $0x10] sm:$0xff]  ;;  %v456_v12 = vld [vmem:[#allocation5 + $0x18] sm:$0xff]  ;;  %v1941_v21 = vshrl.u32 %v313_v20, 7  ;;  %s1447_s19 = smul.u32 48, %s287_s18 }
  0x6c   : > { %1182 = vmatprep.subr.bf16.mxu0 %v1740_v0  ;;  %v1351_v11 = vpack.c.bf16 %v454_v9, %v453_v8  ;;  %v1355_v13 = vpack.c.bf16 %v456_v12, %v455_v10  ;;  %v457_v14 = vld [vmem:[#allocation5 + $0x20] sm:$0xff]  ;;  %v458_v15 = vld [vmem:[#allocation5 + $0x28] sm:$0xff]  ;;  %v459_v17 = vld [vmem:[#allocation5 + $0x30] sm:$0xff]  ;;  %s1095_s28 = smul.u32 768, %s1801_s25  ;;  %s2026_s25 = scalar_lea.sflag [#allocation4], %s287_s18 }
  0x6d   : > { %s2102_s12 = smov (!%p291_p12, %s290_s12), 11  ;;  %v1359_v16 = vpack.c.bf16 %v458_v15, %v457_v14  ;;  %v460_v18 = vld [vmem:[#allocation5 + $0x38] sm:$0xff]  ;;  %v315_v22 = vsub.s32 0, %v1941_v21  ;;  %v1947_v23 = vld [vmem:[%s2072_s5] sm:$0x7]  ;;  %v462_v41 = vld [vmem:[#allocation5 + $0x48] sm:$0xff] }
  0x6e   : > { %s1073_s9 = sshll.u32 %s2102_s12, 2  ;;  %1352 = vmatprep.subr.bf16.mxu1 %v1351_v11  ;;  %v1363_v19 = vpack.c.bf16 %v460_v18, %v459_v17  ;;  %v461_v40 = vld [vmem:[#allocation5 + $0x40] sm:$0xff]  ;;  %v463_v46 = vld [vmem:[#allocation5 + $0x50] sm:$0xff]  ;;  %v464_v47 = vld [vmem:[#allocation5 + $0x58] sm:$0xff]  ;;  %s289_s26 = scalar_lea.vmem [#allocation8], %s1447_s19 }
  0x6f   : > { %s294_s16 = scalar_lea.vmem %s2067_s0, %s1073_s9  ;;  %1183 = vmatpush3.bf16.msra.mxu0 %v1527_v2  ;;  %1354 = vmatpush3.bf16.msra.mxu1 %v1351_v11  ;;  %v316_v24 = vrot.slane %v1947_v23, %v315_v22  ;;  %v1367_v43 = vpack.c.bf16 %v462_v41, %v461_v40  ;;  %v1371_v48 = vpack.c.bf16 %v464_v47, %v463_v46  ;;  %v465_v49 = vld [vmem:[#allocation5 + $0x60] sm:$0xff]  ;;  %v466_v50 = vld [vmem:[#allocation5 + $0x68] sm:$0xff]  ;;  %v467_v52 = vld [vmem:[#allocation5 + $0x70] sm:$0xff]  ;;  %s970_s29 = sshll.u32 %s289_s26, 4  ;;  %s2022_s29 = int_to_ptr.vmem [resolvable:$true] %s970_s29 }
  0x70   : > { %1184 = vmatprep.subr.bf16.mxu0 %v1740_v0  ;;  %v1530_v5 = vld [vmem:[%s294_s16] sm:$0xff]   ;;  %v1531_v6 = vld [vmem:[%s294_s16 + $0x8] sm:$0xff]   ;;  %v1532_v7 = vld [vmem:[%s294_s16 + $0x10] sm:$0xff]   ;;  %1356 = vmatprep.subr.bf16.mxu1 %v1355_v13  ;;  %v1375_v51 = vpack.c.bf16 %v466_v50, %v465_v49  ;;  %s2020_s10 = scalar_lea.hbm %s2073_s6, %s1095_s28  ;;  %s1661_s15 = scalar_lea.vmem %s2022_s29, 768 }
  0x71   : > { %v468_v53 = vld [vmem:[#allocation5 + $0x78] sm:$0xff]  ;;  %v1533_v55 = vld [vmem:[%s2070_s3] sm:$0xff]   ;;  %v1534_v56 = vld [vmem:[%s2070_s3 + $0x8] sm:$0xff]   ;;  %p1662_p13 = scmp.ne.s32.totalorder %s2022_s29, %s1661_s15  ;;  %p2094_p1 = scmp.ne.s32.totalorder %s2081_s7, 0 }
  0x72   : > { %v1379_v54 = vpack.c.bf16 %v468_v53, %v467_v52  ;;  %v1535_v57 = vld [vmem:[%s2070_s3 + $0x10] sm:$0xff]   ;;  %v1536_v58 = vld [vmem:[%s2070_s3 + $0x18] sm:$0xff]   ;;  %v1537_v20 = vld [vmem:[%s2070_s3 + $0x20] sm:$0xff]   ;;  %s1742_s2 = smov [#allocation8]  }
  0x73   : > { %1185 = vmatpush3.bf16.msra.mxu0 %v1528_v3  ;;  %1358 = vmatpush3.bf16.msra.mxu1 %v1355_v13  ;;  %v1538_v22 = vld [vmem:[%s2070_s3 + $0x28] sm:$0xff]   ;;  %v710_v41 = vld [vmem:[#allocation7 + $0x50] sm:$0xff]  ;;  %p1663_p2 = pnand %p1662_p13, %p2094_p1  ;;  %s1665_s13 = sshll.u32 %s1742_s2, 4  ;;  %s1666_s13 = int_to_ptr.vmem [resolvable:$false] %s1665_s13 }
  0x74   : > { %1186 = vmatprep.subr.bf16.mxu0 %v1740_v0  ;;  %1360 = vmatprep.subr.bf16.mxu1 %v1359_v16  ;;  %v714_v47 = vld [vmem:[#allocation7 + $0x70] sm:$0xff]  ;;  %s1667_s12 = scalar_lea.vmem %s1666_s13, 1536  ;;  %p1668_p4 = scmp.lt.s32.totalorder %s2022_s29, %s1666_s13 }
  0x75   : > { %p1664_p3 = pneg %p1663_p2  ;;  %p1669_p7 = scmp.lt.s32.totalorder %s1667_s12, %s1661_s15 }
  0x77   : > { %1187 = vmatpush3.bf16.msra.mxu0 %v1529_v4  ;;  %1362 = vmatpush3.bf16.msra.mxu1 %v1359_v16  ;;  %p1670_p8 = por %p1669_p7, %p1668_p4 }
  0x78   : > { %1241 = vmatprep.subr.bf16.mxu0 %v1740_v0  ;;  %1364 = vmatprep.subr.bf16.mxu1 %v1363_v19 }
  0x79   : > { %p1671_p11 = pnand %p1670_p8, %p1664_p3 }
  0x7a   : > { %1189 = vmatmul.mubr.msk.bf16.vlgmr.msra.gmra.mrb[0].mxu0 %vm356_vm1, %v1530_v5 }
  0x7b   : > { %1192 = vmatprep.mubr.msk.bf16.mxu0 %vm1741_vm0, %v1740_v0  ;;  %1366 = vmatpush3.bf16.msra.mxu1 %v1363_v19 }
  0x7c   : > { %1368 = vmatprep.subr.bf16.mxu1 %v1367_v43  ;;  %1242 = vmatpush3.bf16.msra.mxu0 %v1533_v55 }
  0x7d   : > { %1243 = vmatprep.subr.bf16.mxu0 %v1740_v0 }
  0x7f   : > { %1370 = vmatpush3.bf16.msra.mxu1 %v1367_v43 }
  0x80   : > { %1372 = vmatprep.subr.bf16.mxu1 %v1371_v48  ;;  %1244 = vmatpush3.bf16.msra.mxu0 %v1534_v56 }
  0x81   : > { %1245 = vmatprep.subr.bf16.mxu0 %v1740_v0 }
  0x82   : > { %1193 = vmatmul.mubr.msk.bf16.gmra.mrb[4].mxu0 %vm356_vm1, %v1531_v6 }
  0x83   : > { %1196 = vmatprep.mubr.msk.bf16.mxu0 %vm1741_vm0, %v1740_v0  ;;  %1374 = vmatpush3.bf16.msra.mxu1 %v1371_v48  ;;  %v715_v48 = vld [vmem:[#allocation7 + $0x78] sm:$0xff] }
  0x84   : > { %1376 = vmatprep.subr.bf16.mxu1 %v1375_v51  ;;  %1246 = vmatpush3.bf16.msra.mxu0 %v1535_v57  ;;  %v1411_v49 = vpack.c.bf16 %v715_v48, %v714_v47  ;;  %v942_v47 = vsub.s32 2, %v1941_v21 }
  0x85   : > { %1247 = vmatprep.subr.bf16.mxu0 %v1740_v0 }
  0x87   : > { %1378 = vmatpush3.bf16.msra.mxu1 %v1375_v51 }
  0x88   : > { %1380 = vmatprep.subr.bf16.mxu1 %v1379_v54  ;;  %1248 = vmatpush3.bf16.msra.mxu0 %v1536_v58 }
  0x89   : > { %1249 = vmatprep.subr.bf16.mxu0 %v1740_v0 }
  0x8a   : > { %1197 = vmatmul.mubr.msk.bf16.gmra.mrb[8].mxu0 %vm356_vm1, %v1532_v7 }
  0x8b   : > { %1257 = vmatprep.mubr.msk.bf16.mxu0 %vm1741_vm0, %v1740_v0  ;;  %1382 = vmatpush3.bf16.msra.mxu1 %v1379_v54 }
  0x8c   : > { %1250 = vmatpush3.bf16.msra.mxu0 %v1537_v20 }
  0x8d   : > { %1251 = vmatprep.subr.bf16.mxu0 %v1740_v0 }
  0x90   : > { %1252 = vmatpush3.bf16.msra.mxu0 %v1538_v22 }
  0x91   : > { %1253 = vmatprep.subr.bf16.mxu0 %v1740_v0 }
 0x14d   : > { %v400_v25 = vpop.f32.mrb[0].mxu0 }
 0x14e   : > { %v401_v26 = vadd.f32 %v400_v25, %v316_v24  ;;  %v1190_v27 = vpop.f32.mrb[1].mxu0  ;;  %v1540_v25 = vld [vmem:[%s2070_s3 + $0x38] sm:$0xff]  }
 0x14f   : > { %v403_v28 = vpop.f32.mrb[2].mxu0  ;;  %v701_v27 = vld [vmem:[#allocation7 + $0x8] sm:$0xff] }
 0x150   : > { %v1191_v29 = vpop.f32.mrb[3].mxu0  ;;  %423 = vmax.xlane.f32.xlu0 %v401_v26  ;;  %v404_v30 = vadd.f32 %v403_v28, %v316_v24  ;;  %v702_v28 = vld [vmem:[#allocation7 + $0x10] sm:$0xff] }
 0x154   : > { %425 = vmax.xlane.f32.xlu0 %v404_v30 }
 0x155   : > { %v408_v31 = vpop.f32.mrb[4].mxu0 }
 0x156   : > { %v409_v32 = vadd.f32 %v408_v31, %v316_v24  ;;  %v1194_v33 = vpop.f32.mrb[5].mxu0 }
 0x157   : > { %v411_v34 = vpop.f32.mrb[6].mxu0  ;;  %v705_v33 = vld [vmem:[#allocation7 + $0x28] sm:$0xff] }
 0x158   : > { %v1195_v35 = vpop.f32.mrb[7].mxu0  ;;  %427 = vmax.xlane.f32.xlu1 %v409_v32  ;;  %v412_v36 = vadd.f32 %v411_v34, %v316_v24 }
 0x159   : > { %v706_v35 = vld [vmem:[#allocation7 + $0x30] sm:$0xff] }
 0x15c   : > { %429 = vmax.xlane.f32.xlu1 %v412_v36 }
 0x15d   : > { %v416_v37 = vpop.f32.mrb[8].mxu0 }
 0x15e   : > { %v417_v38 = vadd.f32 %v416_v37, %v316_v24  ;;  %v1198_v39 = vpop.f32.mrb[9].mxu0 }
 0x15f   : > { %v419_v42 = vpop.f32.mrb[10].mxu0  ;;  %v709_v39 = vld [vmem:[#allocation7 + $0x48] sm:$0xff] }
 0x160   : > { %v420_v44 = vadd.f32 %v419_v42, %v316_v24  ;;  %v1199_v45 = vpop.f32.mrb[11].mxu0  ;;  %431 = vmax.xlane.f32.xlu0 %v417_v38  ;;  %v1539_v24 = vld [vmem:[%s2070_s3 + $0x30] sm:$0xff]   ;;  %v711_v42 = vld [vmem:[#allocation7 + $0x58] sm:$0xff] }
 0x161   : > { %1254 = vmatpush3.bf16.msra.mxu0 %v1539_v24  ;;  %v1403_v43 = vpack.c.bf16 %v711_v42, %v710_v41  ;;  %v713_v45 = vld [vmem:[#allocation7 + $0x68] sm:$0xff] }
 0x162   : > { %433 = vmax.xlane.f32.xlu1 %v420_v44  ;;  %1255 = vmatprep.subr.bf16.mxu0 %v1740_v0 }
 0x165   : > { %1256 = vmatpush3.bf16.msra.mxu0 %v1540_v25 }
 0x1dd   : > { %v424_v59 = vpop.xlane.xlu0 %423 }
 0x1de   : > { %v435_v60 = vsub.f32 %v401_v26, %v424_v59  ;;  %v700_v26 = vld [vmem:[#allocation7] sm:$0xff] }
 0x1df   : > { %v1383_v29 = vpack.c.bf16 %v701_v27, %v700_v26 }
 0x1e0   : > { %v441_v61 = vmul.f32 1.442695, %v435_v60 }
 0x1e1   : > { %v426_v62 = vpop.xlane.xlu0 %425  ;;  %1384 = vmatprep.subr.bf16.mxu1 %v1383_v29  ;;  %1416 = vmatprep.subr.bf16.mxu0 %v1383_v29 }
 0x1e2   : > { %1541 = vpow2.f32 %v441_v61  ;;  %v436_v63 = vsub.f32 %v404_v30, %v426_v62  ;;  %v703_v30 = vld [vmem:[#allocation7 + $0x18] sm:$0xff] }
 0x1e3   : > { %v1387_v31 = vpack.c.bf16 %v703_v30, %v702_v28 }
 0x1e4   : > { %v443_v1 = vmul.f32 1.442695, %v436_v63 }
 0x1e5   : > { %v428_v2 = vpop.xlane.xlu1 %427 }
 0x1e6   : > { %1543 = vpow2.f32 %v443_v1  ;;  %v437_v3 = vsub.f32 %v409_v32, %v428_v2  ;;  %v704_v32 = vld [vmem:[#allocation7 + $0x20] sm:$0xff] }
 0x1e7   : > { %v1391_v34 = vpack.c.bf16 %v705_v33, %v704_v32 }
 0x1e8   : > { %v445_v4 = vmul.f32 1.442695, %v437_v3 }
 0x1e9   : > { %v430_v5 = vpop.xlane.xlu1 %429 }
 0x1ea   : > { %1545 = vpow2.f32 %v445_v4  ;;  %v438_v6 = vsub.f32 %v412_v36, %v430_v5  ;;  %v707_v36 = vld [vmem:[#allocation7 + $0x38] sm:$0xff] }
 0x1eb   : > { %v1395_v37 = vpack.c.bf16 %v707_v36, %v706_v35 }
 0x1ec   : > { %v1966_v7 = vpop.eup %1541  ;;  %v447_v8 = vmul.f32 1.442695, %v438_v6 }
 0x1ed   : > { %1232 = vmatprep.mubr.f32.mxu1 %v1966_v7  ;;  %v432_v9 = vpop.xlane.xlu0 %431 }
 0x1ee   : > { %1547 = vpow2.f32 %v447_v8  ;;  %v439_v10 = vsub.f32 %v417_v38, %v432_v9  ;;  %v708_v38 = vld [vmem:[#allocation7 + $0x40] sm:$0xff] }
 0x1ef   : > { %v434_v11 = vpop.xlane.xlu1 %433  ;;  %v1399_v40 = vpack.c.bf16 %v709_v39, %v708_v38 }
 0x1f0   : > { %v1969_v12 = vpop.eup %1543  ;;  %v449_v13 = vmul.f32 1.442695, %v439_v10  ;;  %v440_v14 = vsub.f32 %v420_v44, %v434_v11  ;;  %v712_v44 = vld [vmem:[#allocation7 + $0x60] sm:$0xff] }
 0x1f1   : > { %1233 = vmatmul.mubr.f32.vlgmr.msra.gmra.mrb[0].mxu1 %v1969_v12  ;;  %v1407_v46 = vpack.c.bf16 %v713_v45, %v712_v44 }
 0x1f2   : > { %1549 = vpow2.f32 %v449_v13  ;;  %v451_v15 = vmul.f32 1.442695, %v440_v14  ;;  %1386 = vmatpush3.bf16.msra.mxu1 %v1383_v29 }
 0x1f3   : > { %1388 = vmatprep.subr.bf16.mxu1 %v1387_v31 }
 0x1f4   : > { %v1972_v16 = vpop.eup %1545  ;;  %1551 = vpow2.f32 %v451_v15 }
 0x1f5   : > { %1235 = vmatprep.mubr.f32.mxu1 %v1972_v16 }
 0x1f6   : > { %1390 = vmatpush3.bf16.msra.mxu1 %v1387_v31 }
 0x1f7   : > { %1392 = vmatprep.subr.bf16.mxu1 %v1391_v34 }
 0x1f8   : > { %v1975_v17 = vpop.eup %1547 }
 0x1f9   : > { %1236 = vmatmul.mubr.f32.gmra.mrb[2].mxu1 %v1975_v17 }
 0x1fa   : > { %1394 = vmatpush3.bf16.msra.mxu1 %v1391_v34 }
 0x1fb   : > { %1396 = vmatprep.subr.bf16.mxu1 %v1395_v37 }
 0x1fc   : > { %v1978_v18 = vpop.eup %1549 }
 0x1fd   : > { %1238 = vmatprep.mubr.f32.mxu1 %v1978_v18 }
 0x1fe   : > { %v1981_v19 = vpop.eup %1551  ;;  %1398 = vmatpush3.bf16.msra.mxu1 %v1395_v37 }
 0x1ff   : > { %1239 = vmatmul.mubr.f32.gmra.mrb[4].mxu1 %v1981_v19  ;;  %1400 = vmatprep.subr.bf16.mxu1 %v1399_v40 }
 0x202   : > { %1402 = vmatpush3.bf16.msra.mxu1 %v1399_v40 }
 0x203   : > { %1404 = vmatprep.subr.bf16.mxu1 %v1403_v43 }
 0x206   : > { %1406 = vmatpush3.bf16.msra.mxu1 %v1403_v43 }
 0x207   : > { %1408 = vmatprep.subr.bf16.mxu1 %v1407_v46 }
 0x20a   : > { %1410 = vmatpush3.bf16.msra.mxu1 %v1407_v46 }
 0x20b   : > { %1412 = vmatprep.subr.bf16.mxu1 %v1411_v49 }
 0x20e   : > { %1414 = vmatpush3.bf16.msra.mxu1 %v1411_v49 }
 0x2c4   : > { %v1234_v50 = vpop.f32.mrb[0].mxu1 }
 0x2c5   : > { %1553 = vrcp.f32 %v1234_v50  ;;  %v535_v51 = vpop.f32.mrb[1].mxu1 }
 0x2c6   : > { %1555 = vrcp.f32 %v535_v51 }
 0x2cc   : > { %v1237_v52 = vpop.f32.mrb[2].mxu1 }
 0x2cd   : > { %1557 = vrcp.f32 %v1237_v52  ;;  %v545_v53 = vpop.f32.mrb[3].mxu1  ;;  %v943_v52 = vrot.slane %v1947_v23, %v942_v47 }
 0x2ce   : > { %1559 = vrcp.f32 %v545_v53 }
 0x2cf   : > { %v1554_v54 = vpop.eup %1553 }
 0x2d0   : > { %v1556_v55 = vpop.eup %1555  ;;  %v571_v56 = vmul.f32 %v1554_v54, %v1969_v12 }
 0x2d1   : > { %v570_v57 = vmul.f32 %v1556_v55, %v1966_v7 }
 0x2d2   : > { %v1240_v58 = vpop.f32.mrb[4].mxu1 }
 0x2d3   : > { %1561 = vrcp.f32 %v1240_v58  ;;  %v555_v59 = vpop.f32.mrb[5].mxu1  ;;  %v576_v60 = vpack.c.bf16 %v571_v56, %v570_v57 }
 0x2d4   : > { %1563 = vrcp.f32 %v555_v59 }
 0x2d5   : > { %1258 = vmatmul.mubr.bf16.vlgmr.msra.gmra.mrb[12].mxu0 %v576_v60 }
 0x2d6   : > { %1261 = vmatprep.mubr.msk.bf16.mxu0 %vm1741_vm0, %v1740_v0  ;;  %1418 = vmatpush3.bf16.msra.mxu0 %v1383_v29 }
 0x2d7   : > { %v1558_v61 = vpop.eup %1557  ;;  %1420 = vmatprep.subr.bf16.mxu0 %v1387_v31 }
 0x2d8   : > { %v1560_v62 = vpop.eup %1559  ;;  %v573_v63 = vmul.f32 %v1558_v61, %v1975_v17 }
 0x2d9   : > { %v572_v1 = vmul.f32 %v1560_v62, %v1972_v16 }
 0x2da   : > { %1422 = vmatpush3.bf16.msra.mxu0 %v1387_v31 }
 0x2db   : > { %v577_v2 = vpack.c.bf16 %v573_v63, %v572_v1  ;;  %1424 = vmatprep.subr.bf16.mxu0 %v1391_v34 }
 0x2dd   : > { %v1562_v3 = vpop.eup %1561  ;;  %1262 = vmatmul.mubr.bf16.gmra.mrb[16].mxu0 %v577_v2 }
 0x2de   : > { %v1564_v4 = vpop.eup %1563  ;;  %1265 = vmatprep.mubr.msk.bf16.mxu0 %vm1741_vm0, %v1740_v0  ;;  %v575_v5 = vmul.f32 %v1562_v3, %v1981_v19  ;;  %1426 = vmatpush3.bf16.msra.mxu0 %v1391_v34 }
 0x2df   : > { %v574_v6 = vmul.f32 %v1564_v4, %v1978_v18  ;;  %1428 = vmatprep.subr.bf16.mxu0 %v1395_v37 }
 0x2e1   : > { %v578_v7 = vpack.c.bf16 %v575_v5, %v574_v6 }
 0x2e2   : > { %1430 = vmatpush3.bf16.msra.mxu0 %v1395_v37 }
 0x2e3   : > { %1432 = vmatprep.subr.bf16.mxu0 %v1399_v40 }
 0x2e5   : > { %1266 = vmatmul.mubr.bf16.gmra.mrb[20].mxu0 %v578_v7 }
 0x2e6   : > { %1434 = vmatpush3.bf16.msra.mxu0 %v1399_v40 }
 0x2e7   : > { %1436 = vmatprep.subr.bf16.mxu0 %v1403_v43 }
 0x2ea   : > { %1438 = vmatpush3.bf16.msra.mxu0 %v1403_v43  ;;  %v932_v43 = vsub.s32 1, %v1941_v21 }
 0x2eb   : > { %1440 = vmatprep.subr.bf16.mxu0 %v1407_v46 }
 0x2ee   : > { %1442 = vmatpush3.bf16.msra.mxu0 %v1407_v46 }
 0x2ef   : > { %1444 = vmatprep.subr.bf16.mxu0 %v1411_v49 }
 0x2f2   : > { %1446 = vmatpush3.bf16.msra.mxu0 %v1411_v49  ;;  %v933_v49 = vrot.slane %v1947_v23, %v932_v43 }
 0x3a8   : > { %v677_v8 = vpop.f32.mrb[12].mxu0 }
 0x3a9   : > { %v1259_v9 = vpop.f32.mrb[13].mxu0  ;;  %1301 = vmatprep.mubr.f32.mxu1 %v677_v8 }
 0x3aa   : > { %v680_v0 = vpop.f32.mrb[14].mxu0 }
 0x3ab   : > { %v1260_v10 = vpop.f32.mrb[15].mxu0  ;;  %1302 = vmatmul.mubr.f32.vlgmr.msra.gmra.mrb[6].mxu1 %v680_v0 }
 0x3b0   : > { %v685_v11 = vpop.f32.mrb[16].mxu0 }
 0x3b1   : > { %v1263_v12 = vpop.f32.mrb[17].mxu0  ;;  %1304 = vmatprep.mubr.f32.mxu1 %v685_v11 }
 0x3b2   : > { %v688_v13 = vpop.f32.mrb[18].mxu0 }
 0x3b3   : > { %v1264_v14 = vpop.f32.mrb[19].mxu0  ;;  %1305 = vmatmul.mubr.f32.gmra.mrb[8].mxu1 %v688_v13 }
 0x3b8   : > { %v693_v15 = vpop.f32.mrb[20].mxu0 }
 0x3b9   : > { %v1267_v16 = vpop.f32.mrb[21].mxu0  ;;  %1307 = vmatprep.mubr.f32.mxu1 %v693_v15 }
 0x3ba   : > { %v696_v17 = vpop.f32.mrb[22].mxu0 }
 0x3bb   : > { %v1268_v18 = vpop.f32.mrb[23].mxu0  ;;  %1308 = vmatmul.mubr.f32.gmra.mrb[10].mxu1 %v696_v17 }
 0x47e   : > { %v1303_v19 = vpop.f32.mrb[6].mxu1 }
 0x47f   : > { %v812_v20 = vsub.f32 %v680_v0, %v1303_v19  ;;  %v782_v22 = vpop.f32.mrb[7].mxu1 }
 0x480   : > { %v811_v24 = vsub.f32 %v677_v8, %v782_v22 }
 0x481   : > { %v818_v26 = vmul.f32 %v812_v20, %v812_v20 }
 0x482   : > { %v817_v25 = vmul.f32 %v811_v24, %v811_v24 }
 0x484   : > { %1342 = vmatprep.mubr.f32.mxu0 %v817_v25 }
 0x485   : > { %1343 = vmatmul.mubr.f32.vlgmr.msra.gmra.mrb[24].mxu0 %v818_v26 }
 0x486   : > { %v1306_v27 = vpop.f32.mrb[8].mxu1 }
 0x487   : > { %v814_v28 = vsub.f32 %v688_v13, %v1306_v27  ;;  %v792_v29 = vpop.f32.mrb[9].mxu1 }
 0x488   : > { %v813_v30 = vsub.f32 %v685_v11, %v792_v29 }
 0x489   : > { %v820_v32 = vmul.f32 %v814_v28, %v814_v28 }
 0x48a   : > { %v819_v31 = vmul.f32 %v813_v30, %v813_v30 }
 0x48c   : > { %1345 = vmatprep.mubr.f32.mxu0 %v819_v31 }
 0x48d   : > { %1346 = vmatmul.mubr.f32.gmra.mrb[26].mxu0 %v820_v32 }
 0x48e   : > { %v1309_v33 = vpop.f32.mrb[10].mxu1 }
 0x48f   : > { %v816_v34 = vsub.f32 %v696_v17, %v1309_v33  ;;  %v802_v35 = vpop.f32.mrb[11].mxu1 }
 0x490   : > { %v815_v36 = vsub.f32 %v693_v15, %v802_v35 }
 0x491   : > { %v822_v38 = vmul.f32 %v816_v34, %v816_v34 }
 0x492   : > { %v821_v37 = vmul.f32 %v815_v36, %v815_v36 }
 0x494   : > { %1348 = vmatprep.mubr.f32.mxu0 %v821_v37 }
 0x495   : > { %1349 = vmatmul.mubr.f32.gmra.mrb[28].mxu0 %v822_v38 }
 0x558   : > { %v1344_v39 = vpop.f32.mrb[24].mxu0 }
 0x559   : > { %v895_v40 = vadd.f32 1e-05, %v1344_v39  ;;  %v889_v41 = vpop.f32.mrb[25].mxu0 }
 0x55a   : > { %v890_v42 = vadd.f32 1e-05, %v889_v41 }
 0x55b   : > { %1565 = vrsqrt.f32 %v895_v40 }
 0x55c   : > { %1567 = vrsqrt.f32 %v890_v42 }
 0x560   : > { %v1347_v44 = vpop.f32.mrb[26].mxu0 }
 0x561   : > { %v905_v45 = vadd.f32 1e-05, %v1347_v44  ;;  %v899_v46 = vpop.f32.mrb[27].mxu0 }
 0x562   : > { %v900_v48 = vadd.f32 1e-05, %v899_v46 }
 0x563   : > { %1569 = vrsqrt.f32 %v905_v45 }
 0x564   : > { %1571 = vrsqrt.f32 %v900_v48 }
 0x565   : > { %v1566_v50 = vpop.eup %1565 }
 0x566   : > { %v1568_v51 = vpop.eup %1567  ;;  %v925_v53 = vmul.f32 %v1566_v50, %v812_v20 }
 0x567   : > { %v924_v54 = vmul.f32 %v1568_v51, %v811_v24 }
 0x568   : > { %v935_v55 = vmul.f32 %v933_v49, %v925_v53  ;;  %v1350_v56 = vpop.f32.mrb[28].mxu0 }
 0x569   : > { %v934_v57 = vmul.f32 %v933_v49, %v924_v54  ;;  %v915_v58 = vadd.f32 1e-05, %v1350_v56  ;;  %v909_v59 = vpop.f32.mrb[29].mxu0 }
 0x56a   : > { %v945_v21 = vadd.f32 %v943_v52, %v935_v55  ;;  %v910_v60 = vadd.f32 1e-05, %v909_v59 }
 0x56b   : > { %v944_v61 = vadd.f32 %v943_v52, %v934_v57  ;;  %1573 = vrsqrt.f32 %v915_v58 }
 0x56c   : > { %951 = vst [vmem:[%s289_s26 + $0x8] sm:$0xff] %v945_v21  ;;  %1575 = vrsqrt.f32 %v910_v60 }
 0x56d   : > { %v1570_v62 = vpop.eup %1569  ;;  %950 = vst [vmem:[%s289_s26] sm:$0xff] %v944_v61 }
 0x56e   : > { %v1572_v63 = vpop.eup %1571  ;;  %v927_v1 = vmul.f32 %v1570_v62, %v814_v28 }
 0x56f   : > { %v926_v23 = vmul.f32 %v1572_v63, %v813_v30 }
 0x570   : > { %v937_v2 = vmul.f32 %v933_v49, %v927_v1 }
 0x571   : > { %v936_v3 = vmul.f32 %v933_v49, %v926_v23 }
 0x572   : > { %v947_v4 = vadd.f32 %v943_v52, %v937_v2 }
 0x573   : > { %v946_v5 = vadd.f32 %v943_v52, %v936_v3 }
 0x574   : > { %953 = vst [vmem:[%s289_s26 + $0x18] sm:$0xff] %v947_v4 }
 0x575   : > { %v1574_v6 = vpop.eup %1573  ;;  %952 = vst [vmem:[%s289_s26 + $0x10] sm:$0xff] %v946_v5 }
 0x576   : > { %v1576_v7 = vpop.eup %1575  ;;  %v929_v8 = vmul.f32 %v1574_v6, %v816_v34 }
 0x577   : > { %v928_v9 = vmul.f32 %v1576_v7, %v815_v36 }
 0x578   : > { %v939_v0 = vmul.f32 %v933_v49, %v929_v8 }
 0x579   : > { %v938_v10 = vmul.f32 %v933_v49, %v928_v9 }
 0x57a   : > { %v949_v11 = vadd.f32 %v943_v52, %v939_v0 }
 0x57b   : > { %v948_v12 = vadd.f32 %v943_v52, %v938_v10 }
 0x57c   : > { %955 = vst [vmem:[%s289_s26 + $0x28] sm:$0xff] %v949_v11 }
 0x57d   : > { %954 = vst [vmem:[%s289_s26 + $0x20] sm:$0xff] %v948_v12 }
 0x57e   : > { %1674 = shalt.err (!%p1671_p11)
}
 0x57f   : > { %s1675_s9 = scalar_lea.hbm %s2020_s10, 768  ;;  %s1679_s16 = scalar_lea.hbm %s2073_s6, 1536 }
 0x580   : > { %p1676_p5 = scmp.ne.s32.totalorder %s2020_s10, %s1675_s9  ;;  %p1680_p9 = scmp.lt.u32.totalorder %s2020_s10, %s2073_s6 }
 0x581   : > { %p1681_p10 = scmp.lt.u32.totalorder %s1679_s16, %s1675_s9  ;;  %p1683_p13 = scmp.lt.u32.totalorder %s1675_s9, %s2020_s10 }
 0x582   : > { %p1677_p0 = pnand %p1676_p5, %p2094_p1 }
 0x583   : > { %p1682_p12 = por %p1681_p10, %p1680_p9 }
 0x584   : > { %p1678_p6 = pneg %p1677_p0 }
 0x585   : > { %p1684_p2 = por %p1683_p13, %p1682_p12 }
 0x587   : > { %p1685_p3 = pnand %p1684_p2, %p1678_p6 }
 0x589   : > { %1688 = shalt.err (!%p1685_p3)
}
 0x58a   : > { %s1743_s19 = smov 128   ;;  %s1744_s26 = smov 8  }
 0x58b   : > { %1460 = dma.vmem_to_hbm [thread:$0]  (%p2094_p1), %s2022_s29, 768, %s2020_s10, %s2026_s25, %s1743_s19, %s1743_s19, %s1744_s26  }
 0x58c PF: > { %p1482_p4 = scmp.ge.s32.totalorder %s1731_s24, 2  ;;  %s985_s28 = sand.u32 1, %s1719_s21  }
 0x58d   : > { %p2095_p7 = scmp.ne.s32.totalorder %s2082_s8, 0  ;;  %s986_s11 = scalar_lea.sflag [#allocation4], %s985_s28 }
 0x58f   : > { %p1473_p8 = pnand %p1482_p4, %p2095_p7 }
 0x591   : > { %1714 = dma.done.wait (!%p1473_p8), %s986_s11, 768  }
 0x592   : > { %1716 = vsyncadd (!%p1473_p8), %s986_s11, 4294966528  ;;  %s2096_s14 = sld [smem:[#allocation12_spill]]  ;;  %p18_p11 = scmp.ge.s32.totalorder %s1805_s27, 4  }
 0x593   : > { %s2097_s21 = smov %s1723_s22  ;;  %s2098_s22 = smov %s1727_s23 }
 0x594   : > { %s2100_s24 = smov %s1805_s27  ;;  %20 = sbr.rel (!%p18_p11) target bundleno = 7 (0x7), region = 92 }
 0x598   : > { %s2099_s23 = smov %s2096_s14 }
 0x59b   :  { %991 = vsyncpa [#allocation3], 1 }
 0x59c   :  { %993 = vsyncpa [#allocation3 + $0x1], 1 }
 0x59d   :  { %994 = vsyncpa [#allocation6], 1 }
 0x59e   :  { %995 = vsyncpa [#allocation4], 1 }
 0x59f   :  { %997 = vsyncpa [#allocation4 + $0x1], 1 }

</bundles_post_ra>
